<compile_context>
chip_gen: v7x
topology: tpu7x:2x2x1
jax: 0.10.0
libtpu: 0.0.40
codegen_flags: <defaults>
</compile_context>

<pallas_src>
import jax
import jax.numpy as jnp
from jax import lax
from jax.experimental import pallas as pl
from jax.experimental.pallas import tpu as pltpu


C_IN = 16
C_MID0 = 256
C_MID1 = 1024
C_OUT = 5
C_OUT_PAD = 8                       # sublane-aligned padded output channel count
MID_CHUNK = 128                     # chunk of the 1024-wide mid dimension
N_MID_CHUNKS = C_MID1 // MID_CHUNK  # 8


def _model_tanh_kernel(x_ref, w01t_ref, b01_ref, w2t_ref, b2_ref, o_ref, acc_ref):
    # x_ref:    (C_IN, tile_hw)         input pixels, channels on sublanes
    # w01t_ref: (C_MID1, C_IN)          fused conv+conv_1 weight (transposed)
    # b01_ref:  (C_MID1, 1)             fused bias
    # w2t_ref:  (C_OUT_PAD, C_MID1)     final 1x1 conv weight (transposed, padded 5->8)
    # b2_ref:   (C_OUT_PAD, 1)
    # o_ref:    (C_OUT_PAD, tile_hw)
    # acc_ref:  (C_OUT_PAD, tile_hw) f32 scratch
    x = x_ref[...]
    acc_ref[...] = jnp.zeros_like(acc_ref)

    def chunk_body(k, carry):
        k0 = pl.multiple_of(k * MID_CHUNK, MID_CHUNK)
        w01_c = w01t_ref[pl.ds(k0, MID_CHUNK), :]          # (128, 16)
        b01_c = b01_ref[pl.ds(k0, MID_CHUNK), :]           # (128, 1)
        # fused conv + conv_1 (1x1): 16 -> 128 mid channels of this chunk
        h1 = jnp.dot(w01_c, x, preferred_element_type=jnp.float32) + b01_c
        # v2 = tanh(v1); discarded conv_2(v2) from PyTorch is dead code -> skipped
        # v3 = tanh(v2)
        v3 = jnp.tanh(jnp.tanh(h1))                        # (128, tile_hw)
        w2_c = w2t_ref[:, pl.ds(k0, MID_CHUNK)]            # (8, 128)
        acc_ref[...] += jnp.dot(w2_c, v3, preferred_element_type=jnp.float32)
        return carry

    lax.fori_loop(0, N_MID_CHUNKS, chunk_body, 0)
    o_ref[...] = jax.nn.sigmoid(acc_ref[...] + b2_ref[...])


def _choose_tile_hw(N, HW):
    """Largest lane tile (multiple of 128) under a small per-step VMEM footprint,
    while keeping >= 4 total grid steps (>= 2 per TensorCore on v7x) when the
    problem is big enough.  At MAX_TILE=2048 the per-step residency is ~2.7 MiB
    (2x 128 KiB in, 2x 64 KiB out, 64 KiB acc, <=2 MiB chunk intermediates,
    ~200 KiB weights) -> fits v5e's 16 MiB default scoped VMEM with headroom."""
    LANE = 128
    MAX_TILE = 2048
    hw_pad = pl.cdiv(HW, LANE) * LANE
    tile = min(MAX_TILE, hw_pad)
    tile = max(LANE, (tile // LANE) * LANE)
    while tile > LANE and N * pl.cdiv(hw_pad, tile) < 4:
        tile //= 2
    return max(LANE, tile)


@jax.jit
def model_tanh_forward(x_nchw, w0, b0, w1, b1, w2, b2):
    """x_nchw: (N, 16, H, W) float32 -> (N, 5, H, W) float32."""
    N, C, H, W = x_nchw.shape
    assert C == C_IN
    HW = H * W

    # --- algebraic fusion of the first two 1x1 convs (no nonlinearity between)
    w01 = jnp.dot(w0, w1, preferred_element_type=jnp.float32)          # (16, 1024)
    b01 = jnp.dot(b0, w1, preferred_element_type=jnp.float32) + b1     # (1, 1024)
    w01t = jnp.transpose(w01)                                          # (1024, 16)
    b01t = jnp.reshape(b01, (C_MID1, 1))                               # (1024, 1)

    # --- final projection, transposed and sublane-padded 5 -> 8 output channels
    w2t = jnp.pad(jnp.transpose(w2), ((0, C_OUT_PAD - C_OUT), (0, 0)))       # (8, 1024)
    b2t = jnp.pad(jnp.reshape(b2, (C_OUT, 1)), ((0, C_OUT_PAD - C_OUT), (0, 0)))  # (8, 1)

    # channels-first view: free reshape, no HBM transpose
    x3d = jnp.reshape(x_nchw, (N, C_IN, HW))

    tile_hw = _choose_tile_hw(N, HW)
    hw_pad = pl.cdiv(HW, tile_hw) * tile_hw
    if hw_pad != HW:
        x3d = jnp.pad(x3d, ((0, 0), (0, 0), (0, hw_pad - HW)))

    grid = (N, hw_pad // tile_hw)

    P = N * hw_pad
    cost = pl.CostEstimate(
        flops=2 * P * (C_IN * C_MID1 + C_MID1 * C_OUT_PAD),
        transcendentals=P * (2 * C_MID1 + C_OUT_PAD),
        bytes_accessed=4 * (P * C_IN + P * C_OUT_PAD
                            + C_MID1 * (C_IN + 1) + C_OUT_PAD * (C_MID1 + 1)),
    )

    out3d = pl.pallas_call(
        _model_tanh_kernel,
        out_shape=jax.ShapeDtypeStruct((N, C_OUT_PAD, hw_pad), jnp.float32),
        grid=grid,
        in_specs=[
            pl.BlockSpec((None, C_IN, tile_hw), lambda n, j: (n, 0, j)),
            pl.BlockSpec((C_MID1, C_IN), lambda n, j: (0, 0)),
            pl.BlockSpec((C_MID1, 1), lambda n, j: (0, 0)),
            pl.BlockSpec((C_OUT_PAD, C_MID1), lambda n, j: (0, 0)),
            pl.BlockSpec((C_OUT_PAD, 1), lambda n, j: (0, 0)),
        ],
        out_specs=pl.BlockSpec((None, C_OUT_PAD, tile_hw), lambda n, j: (n, 0, j)),
        scratch_shapes=[pltpu.VMEM((C_OUT_PAD, tile_hw), jnp.float32)],
        compiler_params=pltpu.CompilerParams(
            dimension_semantics=("parallel", "parallel"),
        ),
        cost_estimate=cost,
    )(x3d, w01t, b01t, w2t, b2t)

    # drop padded output channels / padded pixels; (N,5,H*W) -> (N,5,H,W) is free
    out = out3d[:, :C_OUT, :HW]
    return jnp.reshape(out, (N, C_OUT, H, W))


def _init_conv_params(key, c_in, c_out):
    """Deterministic Conv2d(1x1)-style init: U(-1/sqrt(fan_in), 1/sqrt(fan_in)).
    Stored as (C_in, C_out) so the reference can do x @ W directly."""
    kw, kb = jax.random.split(key)
    bound = 1.0 / (c_in ** 0.5)
    w = jax.random.uniform(kw, (c_in, c_out), jnp.float32, -bound, bound)
    b = jax.random.uniform(kb, (1, c_out), jnp.float32, -bound, bound)
    return w, b


def _reference(x_nchw, w0, b0, w1, b1, w2, b2):
    """Unfused pure-JAX reference (matches PyTorch module semantics)."""
    N, C, H, W = x_nchw.shape
    x2d = jnp.transpose(x_nchw, (0, 2, 3, 1)).reshape(N * H * W, C)
    h1 = (x2d @ w0 + b0) @ w1 + b1
    v3 = jnp.tanh(jnp.tanh(h1))
    out = jax.nn.sigmoid(v3 @ w2 + b2)
    return jnp.transpose(out.reshape(N, H, W, C_OUT), (0, 3, 1, 2))


if __name__ == "__main__":
    key = jax.random.PRNGKey(0)
    kx, k0, k1, k2 = jax.random.split(key, 4)

    # Small shapes consistent with the module: N=2, C_in=16, spatial 16x16.
    x = jax.random.normal(kx, (2, C_IN, 16, 16), jnp.float32)

    w0, b0 = _init_conv_params(k0, C_IN, C_MID0)
    w1, b1 = _init_conv_params(k1, C_MID0, C_MID1)
    w2, b2 = _init_conv_params(k2, C_MID1, C_OUT)

    out = model_tanh_forward(x, w0, b0, w1, b1, w2, b2)
    out = jax.block_until_ready(out)

    ref = _reference(x, w0, b0, w1, b1, w2, b2)
    assert out.shape == (2, C_OUT, 16, 16), out.shape
    # Fusing w0@w1 and chunking the 1024-wide contraction only reorder fp
    # accumulation; tolerance stays tight.
    assert jnp.allclose(out, ref, atol=5e-5, rtol=1e-5), "mismatch vs reference"

    print("KERNEL_OK")
</pallas_src>

<mosaic_0001>
module attributes {stable_mosaic.version = 11 : i64} {
  func.func @_model_tanh_kernel(%arg0: i32, %arg1: i32, %arg2: memref<1x16x128xf32, #tpu.memory_space<vmem>>, %arg3: memref<1024x16xf32, #tpu.memory_space<vmem>>, %arg4: memref<1024x1xf32, #tpu.memory_space<vmem>>, %arg5: memref<8x1024xf32, #tpu.memory_space<vmem>>, %arg6: memref<8x1xf32, #tpu.memory_space<vmem>>, %arg7: memref<1x8x128xf32, #tpu.memory_space<vmem>>, %arg8: memref<8x128xf32, #tpu.memory_space<vmem>>) attributes {dimension_semantics = [#tpu.dimension_semantics<parallel>, #tpu.dimension_semantics<parallel>], iteration_bounds = array<i64: 2, 2>, scalar_prefetch = 0 : i64, scratch_operands = 1 : i64, tpu.core_type = #tpu.core_type<tc>, window_params = [{transform_indices = @transform_0, window_bounds = array<i64: 1, 16, 128>}, {pipeline_mode = #tpu.pipeline_mode<synchronous>, transform_indices = @transform_1, window_bounds = array<i64: 1024, 16>}, {pipeline_mode = #tpu.pipeline_mode<synchronous>, transform_indices = @transform_2, window_bounds = array<i64: 1024, 1>}, {pipeline_mode = #tpu.pipeline_mode<synchronous>, transform_indices = @transform_3, window_bounds = array<i64: 8, 1024>}, {pipeline_mode = #tpu.pipeline_mode<synchronous>, transform_indices = @transform_4, window_bounds = array<i64: 8, 1>}, {transform_indices = @transform_5, window_bounds = array<i64: 1, 8, 128>}]} {
    %c0 = arith.constant 0 : index
    %c0_0 = arith.constant 0 : index
    %c0_1 = arith.constant 0 : index
    %0 = vector.load %arg2[%c0, %c0_0, %c0_1] : memref<1x16x128xf32, #tpu.memory_space<vmem>>, vector<1x16x128xf32>
    %1 = vector.shape_cast %0 : vector<1x16x128xf32> to vector<16x128xf32>
    %cst = arith.constant 0.000000e+00 : f32
    %2 = vector.broadcast %cst : f32 to vector<8x128xf32>
    %c0_2 = arith.constant 0 : index
    %c0_3 = arith.constant 0 : index
    %3 = vector.load %arg8[%c0_2, %c0_3] : memref<8x128xf32, #tpu.memory_space<vmem>>, vector<8x128xf32>
    tpu.vector_store %arg8[%c0_2, %c0_3], %2 {strides = array<i32>} : memref<8x128xf32, #tpu.memory_space<vmem>>, vector<8x128xf32>,
    %c0_i32 = arith.constant 0 : i32
    %c8_i32 = arith.constant 8 : i32
    %4 = arith.addi %c0_i32, %c8_i32 : i32
    %c1_i32 = arith.constant 1 : i32
    scf.for %arg9 = %c0_i32 to %4 step %c1_i32  : i32 {
      %c128_i32 = arith.constant 128 : i32
      %17 = arith.muli %arg9, %c128_i32 : i32
      %18 = tpu.assume_multiple %17, 128 : i32
      %19 = arith.index_cast %18 : i32 to index
      %c0_13 = arith.constant 0 : index
      %20 = vector.load %arg3[%19, %c0_13] : memref<1024x16xf32, #tpu.memory_space<vmem>>, vector<128x16xf32>
      %21 = arith.index_cast %18 : i32 to index
      %c0_14 = arith.constant 0 : index
      %22 = vector.load %arg4[%21, %c0_14] : memref<1024x1xf32, #tpu.memory_space<vmem>>, vector<128x1xf32>
      %cst_15 = arith.constant dense<0.000000e+00> : vector<128x128xf32>
      %23 = tpu.matmul %20, %1, %cst_15 {dimension_numbers = #tpu.dot_dimension_numbers<[1], [0], [0], [1], [0, 0, 1, 1], [], []>} : vector<128x16xf32>, vector<16x128xf32>, vector<128x128xf32> -> vector<128x128xf32>
      %24 = vector.broadcast %22 : vector<128x1xf32> to vector<128x128xf32>
      %25 = arith.addf %23, %24 : vector<128x128xf32>
      %26 = math.tanh %25 : vector<128x128xf32>
      %27 = math.tanh %26 : vector<128x128xf32>
      %c0_16 = arith.constant 0 : index
      %28 = arith.index_cast %18 : i32 to index
      %29 = vector.load %arg5[%c0_16, %28] : memref<8x1024xf32, #tpu.memory_space<vmem>>, vector<8x128xf32>
      %c0_17 = arith.constant 0 : index
      %c0_18 = arith.constant 0 : index
      %30 = vector.load %arg8[%c0_17, %c0_18] : memref<8x128xf32, #tpu.memory_space<vmem>>, vector<8x128xf32>
      %cst_19 = arith.constant dense<0.000000e+00> : vector<8x128xf32>
      %31 = tpu.matmul %29, %27, %cst_19 {dimension_numbers = #tpu.dot_dimension_numbers<[1], [0], [0], [1], [0, 0, 1, 1], [], []>} : vector<8x128xf32>, vector<128x128xf32>, vector<8x128xf32> -> vector<8x128xf32>
      %32 = arith.addf %30, %31 : vector<8x128xf32>
      %c0_20 = arith.constant 0 : index
      %c0_21 = arith.constant 0 : index
      %33 = vector.load %arg8[%c0_20, %c0_21] : memref<8x128xf32, #tpu.memory_space<vmem>>, vector<8x128xf32>
      tpu.vector_store %arg8[%c0_20, %c0_21], %32 {strides = array<i32>} : memref<8x128xf32, #tpu.memory_space<vmem>>, vector<8x128xf32>,
    }
    %c8_i32_4 = arith.constant 8 : i32
    %c0_5 = arith.constant 0 : index
    %c0_6 = arith.constant 0 : index
    %5 = vector.load %arg8[%c0_5, %c0_6] : memref<8x128xf32, #tpu.memory_space<vmem>>, vector<8x128xf32>
    %c0_7 = arith.constant 0 : index
    %c0_8 = arith.constant 0 : index
    %6 = vector.load %arg6[%c0_7, %c0_8] : memref<8x1xf32, #tpu.memory_space<vmem>>, vector<8x1xf32>
    %7 = vector.broadcast %6 : vector<8x1xf32> to vector<8x128xf32>
    %8 = arith.addf %5, %7 : vector<8x128xf32>
    %9 = arith.negf %8 : vector<8x128xf32>
    %10 = math.exp %9 : vector<8x128xf32>
    %cst_9 = arith.constant 1.000000e+00 : f32
    %11 = vector.broadcast %cst_9 : f32 to vector<8x128xf32>
    %12 = arith.addf %11, %10 : vector<8x128xf32>
    %13 = arith.divf %11, %12 : vector<8x128xf32>
    %c0_10 = arith.constant 0 : index
    %c0_11 = arith.constant 0 : index
    %c0_12 = arith.constant 0 : index
    %14 = vector.load %arg7[%c0_10, %c0_11, %c0_12] : memref<1x8x128xf32, #tpu.memory_space<vmem>>, vector<1x8x128xf32>
    %15 = vector.shape_cast %14 : vector<1x8x128xf32> to vector<8x128xf32>
    %16 = vector.shape_cast %13 : vector<8x128xf32> to vector<1x8x128xf32>
    tpu.vector_store %arg7[%c0_10, %c0_11, %c0_12], %16 {strides = array<i32>} : memref<1x8x128xf32, #tpu.memory_space<vmem>>, vector<1x8x128xf32>,
    return
  }
  func.func @transform_0(%arg0: i32, %arg1: i32) -> (i32, i32, i32) {
    %c0_i32 = arith.constant 0 : i32
    %c0_i32_0 = arith.constant 0 : i32
    return %arg0, %c0_i32, %arg1 : i32, i32, i32
  }
  func.func @transform_1(%arg0: i32, %arg1: i32) -> (i32, i32) {
    %c0_i32 = arith.constant 0 : i32
    %c0_i32_0 = arith.constant 0 : i32
    %c0_i32_1 = arith.constant 0 : i32
    return %c0_i32, %c0_i32_0 : i32, i32
  }
  func.func @transform_2(%arg0: i32, %arg1: i32) -> (i32, i32) {
    %c0_i32 = arith.constant 0 : i32
    %c0_i32_0 = arith.constant 0 : i32
    %c0_i32_1 = arith.constant 0 : i32
    return %c0_i32, %c0_i32_0 : i32, i32
  }
  func.func @transform_3(%arg0: i32, %arg1: i32) -> (i32, i32) {
    %c0_i32 = arith.constant 0 : i32
    %c0_i32_0 = arith.constant 0 : i32
    %c0_i32_1 = arith.constant 0 : i32
    return %c0_i32, %c0_i32_0 : i32, i32
  }
  func.func @transform_4(%arg0: i32, %arg1: i32) -> (i32, i32) {
    %c0_i32 = arith.constant 0 : i32
    %c0_i32_0 = arith.constant 0 : i32
    %c0_i32_1 = arith.constant 0 : i32
    return %c0_i32, %c0_i32_0 : i32, i32
  }
  func.func @transform_5(%arg0: i32, %arg1: i32) -> (i32, i32, i32) {
    %c0_i32 = arith.constant 0 : i32
    %c0_i32_0 = arith.constant 0 : i32
    return %arg0, %c0_i32, %arg1 : i32, i32, i32
  }
}

</mosaic_0001>

<bundles_post_ra>
// kernel: model_tanh_forward.1
= control target key start
LH: loop header
LB: loop body
LE: loop exit
PB: predicated region body
PF: predicated region fallthrough
CT: control target
= control target key end

     0   :  { %s1228_s18 = smov 0   ;;  %s1230_s19 = smov 0   ;;  %s1414_s0 = inlined_call_operand.vmem [shape: f32[2,16,256], index: 0, kind: input, shape index: {}]   ;;  %s1415_s1 = inlined_call_operand.vmem [shape: f32[1024,16], index: 1, kind: input, shape index: {}]   ;;  %s1416_s2 = inlined_call_operand.vmem [shape: f32[1024,1], index: 2, kind: input, shape index: {}]   ;;  %s1417_s3 = inlined_call_operand.vmem [shape: f32[8,1024], index: 3, kind: input, shape index: {}]   ;;  %s1418_s4 = inlined_call_operand.vmem [shape: f32[8,1], index: 4, kind: input, shape index: {}]   ;;  %s1419_s5 = inlined_call_operand.vmem [shape: f32[2,8,256], index: 5, kind: output, shape index: {}]  }
   0x1   :  { %s1232_s20 = smov 0   ;;  %s1234_s21 = smov 0  }
   0x2   :  { %s1236_s22 = smov 0   ;;  %s1238_s23 = smov 0  }
   0x3   :  { %s1240_s24 = smov 0  }
   0x4 LB: > { %s24_s25 = sadd.s32 1, %s1178_s22  ;;  %s27_s26 = sadd.s32 1, %s1182_s23  ;;  %s1186_s24 = sphi %s1240_s24, %s15_s24   ;;  %s1182_s23 = sphi %s1238_s23, %s1425_s23   ;;  %s1178_s22 = sphi %s1236_s22, %s1424_s22   ;;  %s1174_s21 = sphi %s1234_s21, %s1423_s21   ;;  %s1170_s20 = sphi %s1232_s20, %s1422_s20   ;;  %s1166_s19 = sphi %s1230_s19, %s1421_s19   ;;  %s1162_s18 = sphi %s1228_s18, %s1420_s18  }
   0x5   : > { %p25_p0 = scmp.ge.s32.totalorder %s24_s25, 2  ;;  %p43_p1 = scmp.ne.s32.totalorder %s1166_s19, %s1162_s18 }
   0x6   : > { %p44_p2 = scmp.eq.s32.totalorder %s1186_s24, 0  ;;  %s36_s30 = sadd.s32 1, %s1166_s19 }
   0x7   : > { %s1427_s25 = smov (%p25_p0, %s24_s25), 0  ;;  %s1429_s26 = smov (!%p25_p0, %s27_s26), %s1182_s23 }
   0x8   : > { %p45_p3 = por %p44_p2, %p43_p1  ;;  %p29_p4 = scmp.ge.s32.totalorder %s1429_s26, 2 }
   0x9   : > { %s32_s27 = ssub.s32 %s1178_s22, %s1427_s25  ;;  %p832_p6 = scmp.ge.s32.totalorder %s1186_s24, 4 }
   0xa   : > { %s1431_s26 = smov (%p29_p4, %s1429_s26), 0 }
   0xb   : > { %s31_s28 = ssub.s32 %s1182_s23, %s1431_s26  ;;  %193 = sbr.rel (%p832_p6) target bundleno = 25 (0x19), region = 32 }
   0xc   : > { %s33_s29 = sor.u32 %s32_s27, %s31_s28 }
   0xd   : > { %p34_p5 = scmp.eq.s32.totalorder %s33_s29, 0 }
   0xf   : > { %s1279_s6 = scalar_select %p34_p5, %s1166_s19, %s36_s30  }
  0x12   : > { %196 = sbr.rel (!%p45_p3) target bundleno = 25 (0x19), region = 36  ;;  %s198_s7 = sand.u32 (%p45_p3), 1, %s1166_s19  }
  0x13   : > { %s834_s8 = sshll.u32 (%p45_p3), %s1182_s23, 2  ;;  %s833_s9 = sshll.u32 (%p45_p3), %s198_s7, 4 }
  0x14   : > { %s202_s10 = sadd.s32 (%p45_p3), %s1178_s22, %s834_s8  ;;  %s200_s15 = scalar_lea.vmem (%p45_p3), [#allocation3], %s833_s9 }
  0x15   : > { %s835_s11 = sshll.u32 (%p45_p3), %s202_s10, 3 }
  0x16   : > { %s204_s14 = scalar_lea.vmem (%p45_p3), %s1414_s0, %s835_s11 }
  0x17   : > { %v234_v0 = vld [vmem:[%s204_s14] sm:$0xff] (%p45_p3)  ;;  %v236_v1 = vld [vmem:[%s204_s14 + $0x10] sm:$0xff] (%p45_p3) }
  0x18   : > { %235 = vst [vmem:[%s200_s15] sm:$0xff] (%p45_p3), %v234_v0  ;;  %237 = vst [vmem:[%s200_s15 + $0x8] sm:$0xff] (%p45_p3), %v236_v1 }
  0x19 PF: > { %p836_p7 = scmp.ge.s32.totalorder %s1186_s24, 1  ;;  %p242_p8 = scmp.lt.s32.totalorder %s1186_s24, 5 }
  0x1b   : > { %p243_p9 = pnand %p836_p7, %p242_p8 }
  0x1c   : > { %s249_s16 = sand.u32 (!%p243_p9), 1, %s1162_s18   ;;  %p279_p10 = scmp.lt.s32.totalorder (!%p243_p9), %s1174_s21, 1  ;;  %v1192_v2 = vmov (!%p243_p9), 0.0  }
  0x1d   : > { %246 = sbr.rel (%p243_p9) target bundleno = 570 (0x23a), region = 74  ;;  %s837_s17 = sshll.u32 (!%p243_p9), %s249_s16, 4  ;;  %289 = vst [vmem:[#allocation2] sm:$0xff] (!%p243_p9), %v1192_v2 }
  0x1e   : > { %p281_p11 = scmp.lt.s32.totalorder (!%p243_p9), %s1170_s20, 1  ;;  %s251_s27 = scalar_lea.vmem (!%p243_p9), [#allocation3], %s837_s17 }
  0x1f   : > { %v1294_v3 = vld [vmem:[%s251_s27] sm:$0xff] (!%p243_p9)  ;;  %v1296_v4 = vld [vmem:[%s251_s27 + $0x8] sm:$0xff] (!%p243_p9)  ;;  %s1304_s18 = smov (!%p243_p9), 0  }
  0x24   : > { %s1433_s21 = smov (!%p279_p10, %s1174_s21), 1  ;;  %s1435_s20 = smov (!%p281_p11, %s1170_s20), 1 }
  0x25   : > { %s838_s28 = sshll.u32 %s1433_s21, 1 }
  0x26   : > { %s284_s29 = sadd.s32 %s838_s28, %s1435_s20 }
  0x27   : > { %s839_s30 = sshll.u32 %s284_s29, 3 }
  0x28   : > { %s1302_s9 = scalar_lea.vmem %s1419_s5, %s839_s30 }
  0x29 LB: >> { %v959_v5 = vpack.c.bf16 %v1296_v4, %v1294_v3  ;;  %v1193_v6 = vmov 0   ;;  %s1312_s20 = sshll.u32 %s1190_s18, 7  ;;  %vm411_vm0 = vcmask 130048   ;;  %v1194_v39 = vmov 0.0|0.0   ;;  %s295_s18 = sadd.s32 1, %s1190_s18   ;;  %s1190_s18 = sphi %s1304_s18, %s295_s18  }
  0x2a   : >> { %1057 = vset.pattern.permute.xlu0 %v1193_v6  ;;  %1058 = vset.pattern.permute.xlu1 %v1193_v6  ;;  %s1318_s11 = scalar_lea.vmem %s1415_s1, %s1312_s20  ;;  %s1329_s14 = scalar_lea.vmem %s1416_s2, %s1312_s20  ;;  %vm1195_vm1 = vmmov 0   ;;  %v1196_v40 = vmov 0.0  }
  0x2b   : >> { %960 = vmatprep.subr.bf16.mxu0 %v959_v5  ;;  %v298_v7 = vld [vmem:[%s1318_s11] sm:$0xff]  ;;  %v299_v8 = vld [vmem:[%s1318_s11 + $0x8] sm:$0xff]  ;;  %v300_v9 = vld [vmem:[%s1318_s11 + $0x10] sm:$0xff]  ;;  %963 = vmatprep.subr.bf16.mxu1 %v1194_v39  ;;  %s637_s15 = sshra.s32 %s1312_s20, 7  ;;  %p292_p12 = scmp.ge.s32.totalorder %s295_s18, 8  }
  0x2c   : >> { %962 = vmatpush3.bf16.msra.mxu0 %v959_v5  ;;  %900 = vmatprep.mubr.msk.f32.mxu0 %vm411_vm0, %v298_v7  ;;  %v301_v10 = vld [vmem:[%s1318_s11 + $0x18] sm:$0xff]  ;;  %v302_v11 = vld [vmem:[%s1318_s11 + $0x20] sm:$0xff]  ;;  %v317_v13 = vld [vmem:[%s1329_s14 + $0x10] sm:$0xff]  ;;  %s857_s16 = sshll.u32 %s637_s15, 3 }
  0x2d   : >> { %v315_v12 = vld [vmem:[%s1329_s14] sm:$0xff]  ;;  %v303_v14 = vld [vmem:[%s1318_s11 + $0x28] sm:$0xff]  ;;  %343 = vperm.xlu1 %1058, %v317_v13   ;;  %v304_v16 = vld [vmem:[%s1318_s11 + $0x30] sm:$0xff]  ;;  %956 = vmatprep.mubr.msk.f32.mxu1 %vm1195_vm1, %v1196_v40  ;;  %s640_s28 = scalar_lea.vmem %s1417_s3, %s857_s16 }
  0x2e   : >> { %333 = vperm.xlu0 %1057, %v315_v12   ;;  %v316_v15 = vld [vmem:[%s1329_s14 + $0x8] sm:$0xff]  ;;  %v318_v17 = vld [vmem:[%s1329_s14 + $0x18] sm:$0xff]  ;;  %v319_v19 = vld [vmem:[%s1329_s14 + $0x20] sm:$0xff] }
  0x2f   : >> { %901 = vmatmul.mubr.msk.f32.vlgmr.msra.gmra.mrb[0].mxu0 %vm411_vm0, %v299_v8  ;;  %v305_v18 = vld [vmem:[%s1318_s11 + $0x38] sm:$0xff]  ;;  %v306_v20 = vld [vmem:[%s1318_s11 + $0x40] sm:$0xff]  ;;  %v320_v21 = vld [vmem:[%s1329_s14 + $0x28] sm:$0xff] }
  0x30   : >> { %903 = vmatprep.mubr.msk.f32.mxu0 %vm411_vm0, %v300_v9  ;;  %v307_v22 = vld [vmem:[%s1318_s11 + $0x48] sm:$0xff]  ;;  %v321_v23 = vld [vmem:[%s1329_s14 + $0x30] sm:$0xff]  ;;  %v322_v25 = vld [vmem:[%s1329_s14 + $0x38] sm:$0xff] }
  0x31   : >> { %348 = vperm.xlu1 %1058, %v318_v17   ;;  %v308_v24 = vld [vmem:[%s1318_s11 + $0x50] sm:$0xff]  ;;  %v309_v26 = vld [vmem:[%s1318_s11 + $0x58] sm:$0xff]  ;;  %v323_v27 = vld [vmem:[%s1329_s14 + $0x40] sm:$0xff] }
  0x32   : >> { %338 = vperm.xlu0 %1057, %v316_v15   ;;  %v310_v28 = vld [vmem:[%s1318_s11 + $0x60] sm:$0xff]  ;;  %v324_v29 = vld [vmem:[%s1329_s14 + $0x48] sm:$0xff]  ;;  %v325_v31 = vld [vmem:[%s1329_s14 + $0x50] sm:$0xff] }
  0x33   : >> { %904 = vmatmul.mubr.msk.f32.gmra.mrb[2].mxu0 %vm411_vm0, %v301_v10  ;;  %v311_v30 = vld [vmem:[%s1318_s11 + $0x68] sm:$0xff]  ;;  %v312_v32 = vld [vmem:[%s1318_s11 + $0x70] sm:$0xff]  ;;  %v326_v33 = vld [vmem:[%s1329_s14 + $0x58] sm:$0xff] }
  0x34   : >> { %906 = vmatprep.mubr.msk.f32.mxu0 %vm411_vm0, %v302_v11  ;;  %v313_v34 = vld [vmem:[%s1318_s11 + $0x78] sm:$0xff]  ;;  %v327_v35 = vld [vmem:[%s1329_s14 + $0x60] sm:$0xff]  ;;  %v328_v36 = vld [vmem:[%s1329_s14 + $0x68] sm:$0xff] }
  0x35   : >> { %358 = vperm.xlu1 %1058, %v320_v21   ;;  %v329_v37 = vld [vmem:[%s1329_s14 + $0x70] sm:$0xff]  ;;  %v330_v38 = vld [vmem:[%s1329_s14 + $0x78] sm:$0xff] }
  0x36   : >> { %353 = vperm.xlu0 %1057, %v319_v19  }
  0x37   : >> { %907 = vmatmul.mubr.msk.f32.gmra.mrb[4].mxu0 %vm411_vm0, %v303_v14 }
  0x38   : >> { %909 = vmatprep.mubr.msk.f32.mxu0 %vm411_vm0, %v304_v16 }
  0x39   : >> { %368 = vperm.xlu1 %1058, %v322_v25  }
  0x3a   : >> { %363 = vperm.xlu0 %1057, %v321_v23  }
  0x3b   : >> { %910 = vmatmul.mubr.msk.f32.gmra.mrb[6].mxu0 %vm411_vm0, %v305_v18 }
  0x3c   : >> { %912 = vmatprep.mubr.msk.f32.mxu0 %vm411_vm0, %v306_v20 }
  0x3d   : >> { %378 = vperm.xlu1 %1058, %v324_v29  }
  0x3e   : >> { %373 = vperm.xlu0 %1057, %v323_v27  }
  0x3f   : >> { %913 = vmatmul.mubr.msk.f32.gmra.mrb[8].mxu0 %vm411_vm0, %v307_v22 }
  0x40   : >> { %915 = vmatprep.mubr.msk.f32.mxu0 %vm411_vm0, %v308_v24 }
  0x41   : >> { %388 = vperm.xlu1 %1058, %v326_v33  }
  0x42   : >> { %383 = vperm.xlu0 %1057, %v325_v31  }
  0x43   : >> { %916 = vmatmul.mubr.msk.f32.gmra.mrb[10].mxu0 %vm411_vm0, %v309_v26 }
  0x44   : >> { %918 = vmatprep.mubr.msk.f32.mxu0 %vm411_vm0, %v310_v28 }
  0x45   : >> { %398 = vperm.xlu1 %1058, %v328_v36  }
  0x46   : >> { %393 = vperm.xlu0 %1057, %v327_v35  }
  0x47   : >> { %919 = vmatmul.mubr.msk.f32.gmra.mrb[12].mxu0 %vm411_vm0, %v311_v30 }
  0x48   : >> { %921 = vmatprep.mubr.msk.f32.mxu0 %vm411_vm0, %v312_v32 }
  0x49   : >> { %408 = vperm.xlu1 %1058, %v330_v38  }
  0x4a   : >> { %403 = vperm.xlu0 %1057, %v329_v37  }
  0x4b   : >> { %922 = vmatmul.mubr.msk.f32.gmra.mrb[14].mxu0 %vm411_vm0, %v313_v34 }
  0xac   : >> { %v344_v41 = vpop.permute.xlu1 %343 }
  0xad   : >> { %v334_v42 = vpop.permute.xlu0 %333 }
  0xb0   : >> { %v349_v43 = vpop.permute.xlu1 %348 }
  0xb1   : >> { %v339_v44 = vpop.permute.xlu0 %338 }
  0xb4   : >> { %v359_v45 = vpop.permute.xlu1 %358 }
  0xb5   : >> { %v354_v46 = vpop.permute.xlu0 %353 }
  0xb8   : >> { %v369_v51 = vpop.permute.xlu1 %368 }
  0xb9   : >> { %v364_v53 = vpop.permute.xlu0 %363 }
  0xbc   : >> { %v379_v60 = vpop.permute.xlu1 %378 }
  0xbd   : >> { %v374_v62 = vpop.permute.xlu0 %373 }
  0xc0   : >> { %v389_v7 = vpop.permute.xlu1 %388 }
  0xc1   : >> { %v384_v10 = vpop.permute.xlu0 %383 }
  0xc4   : >> { %v399_v20 = vpop.permute.xlu1 %398 }
  0xc5   : >> { %v394_v22 = vpop.permute.xlu0 %393 }
  0xc8   : >> { %v409_v33 = vpop.permute.xlu1 %408 }
  0xc9   : >> { %v404_v36 = vpop.permute.xlu0 %403 }
 0x102   : >> { %v902_v47 = vpop.f32.mrb[0].mxu0 }
 0x103   : >> { %v532_v48 = vadd.f32 %v902_v47, %v339_v44  ;;  %v526_v49 = vpop.f32.mrb[1].mxu0 }
 0x104   : >> { %v527_v50 = vadd.f32 %v526_v49, %v334_v42 }
 0x105   : >> { %1059 = vtanh.f32 %v532_v48 }
 0x106   : >> { %1061 = vtanh.f32 %v527_v50  ;;  %v905_v52 = vpop.f32.mrb[2].mxu0 }
 0x107   : >> { %v542_v54 = vadd.f32 %v905_v52, %v349_v43  ;;  %v536_v55 = vpop.f32.mrb[3].mxu0 }
 0x108   : >> { %v537_v56 = vadd.f32 %v536_v55, %v344_v41 }
 0x109   : >> { %1063 = vtanh.f32 %v542_v54 }
 0x10a   : >> { %1065 = vtanh.f32 %v537_v56  ;;  %v908_v57 = vpop.f32.mrb[4].mxu0 }
 0x10b   : >> { %v552_v58 = vadd.f32 %v908_v57, %v359_v45  ;;  %v546_v59 = vpop.f32.mrb[5].mxu0 }
 0x10c   : >> { %v547_v61 = vadd.f32 %v546_v59, %v354_v46 }
 0x10d   : >> { %1067 = vtanh.f32 %v552_v58 }
 0x10e   : >> { %1069 = vtanh.f32 %v547_v61  ;;  %v911_v63 = vpop.f32.mrb[6].mxu0 }
 0x10f   : >> { %v1060_v0 = vpop.eup %1059  ;;  %v562_v1 = vadd.f32 %v911_v63, %v369_v51  ;;  %v556_v2 = vpop.f32.mrb[7].mxu0 }
 0x110   : >> { %v1062_v5 = vpop.eup %1061  ;;  %1071 = vtanh.f32 %v1060_v0  ;;  %v557_v6 = vadd.f32 %v556_v2, %v364_v53 }
 0x111   : >> { %1073 = vtanh.f32 %v1062_v5 }
 0x112   : >> { %1075 = vtanh.f32 %v562_v1  ;;  %v914_v8 = vpop.f32.mrb[8].mxu0 }
 0x113   : >> { %v1064_v9 = vpop.eup %1063  ;;  %1077 = vtanh.f32 %v557_v6  ;;  %v572_v11 = vadd.f32 %v914_v8, %v379_v60  ;;  %v566_v12 = vpop.f32.mrb[9].mxu0  ;;  %v641_v6 = vld [vmem:[%s640_s28] sm:$0xff] }
 0x114   : >> { %v1066_v13 = vpop.eup %1065  ;;  %1079 = vtanh.f32 %v1064_v9  ;;  %v567_v14 = vadd.f32 %v566_v12, %v374_v62 }
 0x115   : >> { %1081 = vtanh.f32 %v1066_v13 }
 0x116   : >> { %1083 = vtanh.f32 %v572_v11  ;;  %v917_v15 = vpop.f32.mrb[10].mxu0  ;;  %v1197_v11 = vmov (%p292_p12), 0  }
 0x117   : >> { %v1068_v16 = vpop.eup %1067  ;;  %1085 = vtanh.f32 %v567_v14  ;;  %v582_v17 = vadd.f32 %v917_v15, %v389_v7  ;;  %v576_v18 = vpop.f32.mrb[11].mxu0  ;;  %v642_v7 = vld [vmem:[#allocation2] sm:$0xff]  ;;  %1123 = vset.pattern.permute.xlu0 (%p292_p12), %v1197_v11 }
 0x118   : >> { %v1070_v19 = vpop.eup %1069  ;;  %1087 = vtanh.f32 %v1068_v16  ;;  %v577_v21 = vadd.f32 %v576_v18, %v384_v10 }
 0x119   : >> { %1089 = vtanh.f32 %v1070_v19 }
 0x11a   : >> { %v1072_v23 = vpop.eup %1071  ;;  %1091 = vtanh.f32 %v582_v17  ;;  %v920_v24 = vpop.f32.mrb[12].mxu0 }
 0x11b   : >> { %v1074_v25 = vpop.eup %1073  ;;  %1093 = vtanh.f32 %v577_v21  ;;  %v592_v26 = vadd.f32 %v920_v24, %v399_v20  ;;  %v586_v27 = vpop.f32.mrb[13].mxu0 }
 0x11c   : >> { %v1076_v28 = vpop.eup %1075  ;;  %v587_v29 = vadd.f32 %v586_v27, %v394_v22  ;;  %v964_v30 = vpack.c.bf16 %v1072_v23, %v1074_v25 }
 0x11d   : >> { %v1078_v31 = vpop.eup %1077  ;;  %1095 = vtanh.f32 %v1076_v28 }
 0x11e   : >> { %v1080_v32 = vpop.eup %1079  ;;  %1097 = vtanh.f32 %v1078_v31  ;;  %v923_v34 = vpop.f32.mrb[14].mxu0  ;;  %965 = vmatpush3.bf16.msra.mxu1 %v964_v30 }
 0x11f   : >> { %v1082_v35 = vpop.eup %1081  ;;  %1099 = vtanh.f32 %v592_v26  ;;  %v602_v37 = vadd.f32 %v923_v34, %v409_v33  ;;  %v596_v38 = vpop.f32.mrb[15].mxu0  ;;  %966 = vmatprep.subr.bf16.mxu1 %v1194_v39 }
 0x120   : >> { %v1084_v40 = vpop.eup %1083  ;;  %1101 = vtanh.f32 %v587_v29  ;;  %v597_v41 = vadd.f32 %v596_v38, %v404_v36  ;;  %v967_v42 = vpack.c.bf16 %v1080_v32, %v1082_v35 }
 0x121   : >> { %v1086_v43 = vpop.eup %1085  ;;  %1103 = vtanh.f32 %v1084_v40 }
 0x122   : >> { %v1088_v44 = vpop.eup %1087  ;;  %1105 = vtanh.f32 %v1086_v43  ;;  %968 = vmatpush3.bf16.msra.mxu1 %v967_v42 }
 0x123   : >> { %v1090_v45 = vpop.eup %1089  ;;  %1107 = vtanh.f32 %v602_v37  ;;  %969 = vmatprep.subr.bf16.mxu1 %v1194_v39 }
 0x124   : >> { %v1092_v46 = vpop.eup %1091  ;;  %1109 = vtanh.f32 %v597_v41  ;;  %v970_v47 = vpack.c.bf16 %v1088_v44, %v1090_v45 }
 0x125   : >> { %v1094_v48 = vpop.eup %1093  ;;  %1111 = vtanh.f32 %v1092_v46 }
 0x126   : >> { %1113 = vtanh.f32 %v1094_v48  ;;  %971 = vmatpush3.bf16.msra.mxu1 %v970_v47 }
 0x127   : >> { %v1096_v49 = vpop.eup %1095  ;;  %972 = vmatprep.subr.bf16.mxu1 %v1194_v39 }
 0x128   : >> { %v1098_v50 = vpop.eup %1097 }
 0x129   : >> { %v1100_v51 = vpop.eup %1099  ;;  %v973_v52 = vpack.c.bf16 %v1096_v49, %v1098_v50 }
 0x12a   : >> { %v1102_v53 = vpop.eup %1101  ;;  %1115 = vtanh.f32 %v1100_v51 }
 0x12b   : >> { %v1104_v54 = vpop.eup %1103  ;;  %1117 = vtanh.f32 %v1102_v53  ;;  %974 = vmatpush3.bf16.msra.mxu1 %v973_v52 }
 0x12c   : >> { %v1106_v55 = vpop.eup %1105  ;;  %975 = vmatprep.subr.bf16.mxu1 %v1194_v39 }
 0x12d   : >> { %v1108_v56 = vpop.eup %1107  ;;  %v976_v57 = vpack.c.bf16 %v1104_v54, %v1106_v55 }
 0x12e   : >> { %v1110_v58 = vpop.eup %1109  ;;  %1119 = vtanh.f32 %v1108_v56 }
 0x12f   : >> { %v1112_v59 = vpop.eup %1111  ;;  %1121 = vtanh.f32 %v1110_v58  ;;  %977 = vmatpush3.bf16.msra.mxu1 %v976_v57 }
 0x130   : >> { %v1114_v60 = vpop.eup %1113  ;;  %978 = vmatprep.subr.bf16.mxu1 %v1194_v39 }
 0x131   : >> { %v979_v61 = vpack.c.bf16 %v1112_v59, %v1114_v60 }
 0x133   : >> { %980 = vmatpush3.bf16.msra.mxu1 %v979_v61 }
 0x134   : >> { %v1116_v62 = vpop.eup %1115  ;;  %981 = vmatprep.subr.bf16.mxu1 %v1194_v39 }
 0x135   : >> { %v1118_v63 = vpop.eup %1117 }
 0x136   : >> { %v982_v0 = vpack.c.bf16 %v1116_v62, %v1118_v63 }
 0x138   : >> { %v1120_v1 = vpop.eup %1119  ;;  %983 = vmatpush3.bf16.msra.mxu1 %v982_v0 }
 0x139   : >> { %v1122_v2 = vpop.eup %1121  ;;  %984 = vmatprep.subr.bf16.mxu1 %v1194_v39  ;;  %v716_v39 = vld [vmem:[%s1418_s4] sm:$0xff] (%p292_p12) }
 0x13a   : >> { %v985_v5 = vpack.c.bf16 %v1120_v1, %v1122_v2  ;;  %719 = vperm.xlu0 (%p292_p12), %1123, %v716_v39  }
 0x13c   : >> { %986 = vmatpush3.bf16.msra.mxu1 %v985_v5 }
 0x13f   : >> { %957 = vmatmul.mubr.f32.vlgmr.msra.gmra.mrb[0].mxu1 %v641_v6 }
 0x1b9   : > { %v720_v13 = vpop.permute.xlu0 (%p292_p12), %719 }
 0x20f   : > { %294 = sbr.rel (!%p292_p12) target bundleno = 41 (0x29), region = 123 }
 0x212   : >> { %v709_v8 = vpop.f32.mrb[0].mxu1 }
 0x213   : >> { %v713_v9 = vadd.f32 %v709_v8, %v642_v7  ;;  %v958_v10 = vpop.f32.mrb[1].mxu1 }
 0x215   : >> { %714 = vst [vmem:[#allocation2] sm:$0xff] %v713_v9 }
 0x21c   : > { %v715_v12 = vld [vmem:[#allocation2] sm:$0xff] }
 0x21d   : > { %v722_v14 = vadd.f32 %v720_v13, %v715_v12 }
 0x21f   : > { %v858_v15 = vmul.f32 -1.442695, %v722_v14 }
 0x221   : > { %1124 = vpow2.f32 %v858_v15 }
 0x22b   : > { %v1125_v16 = vpop.eup %1124 }
 0x22c   : > { %v726_v17 = vadd.f32 1.0, %v1125_v16 }
 0x22e   : > { %1126 = vrcp.f32 %v726_v17 }
 0x238   : > { %v1127_v18 = vpop.eup %1126 }
 0x239   : > { %729 = vst [vmem:[%s1302_s9] sm:$0xff] %v1127_v18 }
 0x23a PF: > { %s15_s24 = sadd.s32 1, %s1186_s24   ;;  %s1420_s18 = smov %s1166_s19 }
 0x23b   : > { %p12_p13 = scmp.ge.s32.totalorder %s15_s24, 6   ;;  %s1421_s19 = smov %s1279_s6 }
 0x23c   : > { %s1422_s20 = smov %s1178_s22  ;;  %s1423_s21 = smov %s1182_s23 }
 0x23d   : > { %s1424_s22 = smov %s1427_s25  ;;  %s1425_s23 = smov %s1431_s26 }
 0x23e   :  { %14 = sbr.rel (!%p12_p13) target bundleno = 4 (0x4), region = 134 }

</bundles_post_ra>
